<compile_context>
chip_gen: v5e
topology: v5e:2x2
jax: 0.10.0
libtpu: 0.0.40
codegen_flags: <defaults>
</compile_context>

<pallas_src>
from functools import partial

import numpy as np
import jax
import jax.numpy as jnp
from jax import lax
from jax.experimental import pallas as pl
from jax.experimental.pallas import tpu as pltpu


def _cdiv(a, b):
    return (a + b - 1) // b


def _round_up(n, m):
    return _cdiv(n, m) * m


def mlp_kernel(x_ref, w1_ref, w2p_ref, w2n_ref, b2_ref, o_ref, z_sc, *, cr, unroll):
    # fc1 (+ bias, via the augmented ones column of x / bias row of w1) on the MXU.
    # f32 accumulation into a VMEM scratch that the epilogue then streams in chunks.
    z_sc[...] = jnp.dot(x_ref[...], w1_ref[...], preferred_element_type=jnp.float32)

    w2p = w2p_ref[...]            # (1, H) f32 : fc2.weight
    w2n = w2n_ref[...]            # (1, H) f32 : 0.01 * fc2.weight (LeakyReLU slope pre-folded)
    b2 = b2_ref[0, 0]             # scalar from SMEM
    nchunks = z_sc.shape[0] // cr

    def chunk(c, carry):
        r = pl.multiple_of(c * cr, cr)
        z = z_sc[pl.ds(r, cr), :]                                     # (cr, H) f32, vreg-resident
        # LeakyReLU fused into fc2:  sum_h leaky(z)*w2  ==  sum_h z * where(z>0, w2, 0.01*w2)
        y = jnp.sum(z * jnp.where(z > 0, w2p, w2n), axis=-1) + b2     # (cr,)
        o_ref[c, :] = y                                               # one output row per chunk
        return carry

    lax.fori_loop(0, nchunks, chunk, 0, unroll=unroll)


def _vmem_bytes(tb, dp, h, cr, in_bytes):
    """Rough VMEM footprint (lane/sublane padded) of one pallas_call instance."""
    dpad = _round_up(dp, 128)
    hpad = _round_up(h, 128)
    x_buf = 2 * tb * dpad * in_bytes                        # double-buffered x tiles
    w_res = dpad * hpad * in_bytes + 2 * 8 * hpad * 4       # resident w1 + w2p/w2n rows
    z_buf = tb * hpad * 4                                   # f32 z1 scratch
    o_buf = 2 * _round_up(tb // cr, 8) * _round_up(cr, 128) * 4
    return x_buf + w_res + z_buf + o_buf


def net_forward(x, w1, b1, w2, b2, *, tb=8192, compute_dtype=jnp.float32):
    """x: (B, D); w1: (D, H); b1: (1, H); w2: (1, H); b2: (1, 1) -> (B, 1) float32."""
    B, D = x.shape
    H = w1.shape[1]
    Dp = D + 1                                  # ones column appended to x, bias row to w1
    in_bytes = np.dtype(compute_dtype).itemsize

    # Epilogue chunk rows: keep the (cr, H) f32 chain at <= ~16 vregs per live value.
    cr = 64
    while cr > 8 and cr * H * 4 > 64 * 1024:
        cr //= 2

    # Batch tile: large per-step x DMA, but >= ~8 grid steps for pipeline depth / 2-TC sharding.
    # Always a multiple of 128 (hence of cr).
    tb_eff = max(128, min(tb, _round_up(_cdiv(B, 8), 128), _round_up(B, 128)))

    # Explicit VMEM budget (fits v7x's 64 MiB with headroom); shrink the tile if needed.
    vmem_budget = 40 << 20
    while tb_eff > 128 and _vmem_bytes(tb_eff, Dp, H, cr, in_bytes) > vmem_budget:
        tb_eff = max(128, _round_up(tb_eff // 2, 128))
    est = _vmem_bytes(tb_eff, Dp, H, cr, in_bytes)
    vmem_limit = int(min(vmem_budget + (8 << 20), max(32 << 20, est + est // 4 + (1 << 20))))
    # Guard the "w1 resident in VMEM" assumption (a much larger hidden layer would need an
    # H-axis grid with an accumulator instead of a single constant-index-map block).
    assert _round_up(Dp, 128) * _round_up(H, 128) * in_bytes <= (8 << 20), (
        "hidden layer too large for a single VMEM-resident w1 block; tile over H")

    num_tiles = _cdiv(B, tb_eff)
    b_pad = num_tiles * tb_eff
    nchunks = tb_eff // cr
    unroll = nchunks if nchunks <= 8 else 8

    # Operand prep: fold fc1 bias into an augmented K column; fold LeakyReLU slope into fc2.
    xc = x.astype(compute_dtype)
    x_aug = jnp.concatenate([xc, jnp.ones((B, 1), compute_dtype)], axis=1)          # (B, D+1)
    if b_pad != B:
        x_aug = jnp.pad(x_aug, ((0, b_pad - B), (0, 0)))       # pad rows -> garbage, sliced off
    w1_aug = jnp.concatenate([w1.reshape(D, H), b1.reshape(1, H)],
                             axis=0).astype(compute_dtype)                          # (D+1, H)
    w2p = w2.reshape(1, H).astype(jnp.float32)
    w2n = 0.01 * w2p                                            # LeakyReLU negative slope
    b2_f = b2.reshape(1, 1).astype(jnp.float32)

    # Deepen x buffering when per-step DMA blocks stay small (latency not hidden by 2 buffers).
    x_spec_kwargs = {}
    if num_tiles >= 4 and tb_eff * Dp * in_bytes < (128 << 10):
        x_spec_kwargs["pipeline_mode"] = pl.Buffered(3)
    x_spec = pl.BlockSpec((tb_eff, Dp), lambda i: (i, 0), **x_spec_kwargs)

    out2d = pl.pallas_call(
        partial(mlp_kernel, cr=cr, unroll=unroll),
        out_shape=jax.ShapeDtypeStruct((num_tiles * nchunks, cr), jnp.float32),
        grid=(num_tiles,),
        in_specs=[
            x_spec,                                                    # x tile, pipelined
            pl.BlockSpec((Dp, H), lambda i: (0, 0)),                   # w1 (+bias row): resident
            pl.BlockSpec((1, H), lambda i: (0, 0)),                    # w2: resident
            pl.BlockSpec((1, H), lambda i: (0, 0)),                    # 0.01*w2: resident
            pl.BlockSpec(memory_space=pltpu.MemorySpace.SMEM),         # b2 scalar in SMEM
        ],
        out_specs=pl.BlockSpec((nchunks, cr), lambda i: (i, 0)),
        scratch_shapes=[pltpu.VMEM((tb_eff, H), jnp.float32)],
        compiler_params=pltpu.CompilerParams(
            dimension_semantics=("parallel",),                         # v7x: shard batch over TCs
            vmem_limit_bytes=vmem_limit,
        ),
    )(x_aug, w1_aug, w2p, w2n, b2_f)

    return out2d.reshape(b_pad)[:B].reshape(B, 1)


def init_params(key, input_size, hidden=256):
    # Mimic PyTorch nn.Linear default init: U(-1/sqrt(fan_in), 1/sqrt(fan_in)).
    k1, k2, k3, k4 = jax.random.split(key, 4)
    bound1 = 1.0 / jnp.sqrt(float(input_size))
    bound2 = 1.0 / jnp.sqrt(float(hidden))
    w1 = jax.random.uniform(k1, (input_size, hidden), jnp.float32, -bound1, bound1)
    b1 = jax.random.uniform(k2, (1, hidden), jnp.float32, -bound1, bound1)
    w2 = jax.random.uniform(k3, (1, hidden), jnp.float32, -bound2, bound2)   # fc2.weight layout
    b2 = jax.random.uniform(k4, (1, 1), jnp.float32, -bound2, bound2)
    return w1, b1, w2, b2


if __name__ == "__main__":
    key = jax.random.PRNGKey(0)
    kx, kp = jax.random.split(key)

    batch, input_size, hidden = 8, 32, 256
    x = jax.random.normal(kx, (batch, input_size), dtype=jnp.float32)
    w1, b1, w2, b2 = init_params(kp, input_size, hidden)

    def torch_ref(xq, w1q, b1q):
        z1 = xq @ w1q + b1q
        a1 = jnp.where(z1 > 0, z1, 0.01 * z1)
        return a1 @ w2.T + b2

    # float32 path: PyTorch-parity semantics (tolerance covers TPU matmul precision modes).
    out = jax.block_until_ready(net_forward(x, w1, b1, w2, b2))
    ref = torch_ref(x, w1, b1)
    assert out.shape == (batch, 1)
    assert jnp.allclose(out, ref, atol=1e-2, rtol=1e-2)

    # bfloat16 fast path: compare against a reference with matching fc1-input quantization.
    out_bf16 = jax.block_until_ready(
        net_forward(x, w1, b1, w2, b2, compute_dtype=jnp.bfloat16))
    q = lambda a: a.astype(jnp.bfloat16).astype(jnp.float32)
    ref_bf16 = torch_ref(q(x), q(w1), q(b1))
    assert jnp.allclose(out_bf16, ref_bf16, atol=1e-3, rtol=1e-3)

    print("KERNEL_OK")
</pallas_src>

<mosaic_0001>
module attributes {stable_mosaic.version = 11 : i64} {
  func.func @mlp_kernel(%arg0: i32, %arg1: memref<128x33xf32, #tpu.memory_space<vmem>>, %arg2: memref<33x256xf32, #tpu.memory_space<vmem>>, %arg3: memref<1x256xf32, #tpu.memory_space<vmem>>, %arg4: memref<1x256xf32, #tpu.memory_space<vmem>>, %arg5: memref<1x1xf32, #tpu.memory_space<smem>>, %arg6: memref<2x64xf32, #tpu.memory_space<vmem>>, %arg7: memref<128x256xf32, #tpu.memory_space<vmem>>) attributes {dimension_semantics = [#tpu.dimension_semantics<parallel>], iteration_bounds = array<i64: 1>, scalar_prefetch = 0 : i64, scratch_operands = 1 : i64, tpu.core_type = #tpu.core_type<tc>, window_params = [{transform_indices = @transform_0, window_bounds = array<i64: 128, 33>}, {pipeline_mode = #tpu.pipeline_mode<synchronous>, transform_indices = @transform_1, window_bounds = array<i64: 33, 256>}, {pipeline_mode = #tpu.pipeline_mode<synchronous>, transform_indices = @transform_2, window_bounds = array<i64: 1, 256>}, {pipeline_mode = #tpu.pipeline_mode<synchronous>, transform_indices = @transform_3, window_bounds = array<i64: 1, 256>}, {transform_indices = @transform_4, window_bounds = array<i64: 1, 1>}, {transform_indices = @transform_5, window_bounds = array<i64: 2, 64>}]} {
    %c0 = arith.constant 0 : index
    %c0_0 = arith.constant 0 : index
    %0 = vector.load %arg1[%c0, %c0_0] : memref<128x33xf32, #tpu.memory_space<vmem>>, vector<128x33xf32>
    %c0_1 = arith.constant 0 : index
    %c0_2 = arith.constant 0 : index
    %1 = vector.load %arg2[%c0_1, %c0_2] : memref<33x256xf32, #tpu.memory_space<vmem>>, vector<33x256xf32>
    %cst = arith.constant dense<0.000000e+00> : vector<128x256xf32>
    %2 = tpu.matmul %0, %1, %cst {dimension_numbers = #tpu.dot_dimension_numbers<[1], [0], [0], [1], [0, 0, 1, 1], [], []>} : vector<128x33xf32>, vector<33x256xf32>, vector<128x256xf32> -> vector<128x256xf32>
    %c0_3 = arith.constant 0 : index
    %c0_4 = arith.constant 0 : index
    %3 = vector.load %arg7[%c0_3, %c0_4] : memref<128x256xf32, #tpu.memory_space<vmem>>, vector<128x256xf32>
    tpu.vector_store %arg7[%c0_3, %c0_4], %2 {strides = array<i32>} : memref<128x256xf32, #tpu.memory_space<vmem>>, vector<128x256xf32>,
    %c0_5 = arith.constant 0 : index
    %c0_6 = arith.constant 0 : index
    %4 = vector.load %arg3[%c0_5, %c0_6] : memref<1x256xf32, #tpu.memory_space<vmem>>, vector<1x256xf32>
    %c0_7 = arith.constant 0 : index
    %c0_8 = arith.constant 0 : index
    %5 = vector.load %arg4[%c0_7, %c0_8] : memref<1x256xf32, #tpu.memory_space<vmem>>, vector<1x256xf32>
    %c0_9 = arith.constant 0 : index
    %c0_10 = arith.constant 0 : index
    %6 = memref.load %arg5[%c0_9, %c0_10] : memref<1x1xf32, #tpu.memory_space<smem>>
    %c0_i32 = arith.constant 0 : i32
    %c64_i32 = arith.constant 64 : i32
    %7 = arith.muli %c0_i32, %c64_i32 : i32
    %8 = tpu.assume_multiple %7, 64 : i32
    %9 = arith.index_cast %8 : i32 to index
    %c0_11 = arith.constant 0 : index
    %10 = vector.load %arg7[%9, %c0_11] : memref<128x256xf32, #tpu.memory_space<vmem>>, vector<64x256xf32>
    %cst_12 = arith.constant 0.000000e+00 : f32
    %11 = vector.broadcast %cst_12 : f32 to vector<64x256xf32>
    %12 = arith.cmpf ogt, %10, %11 : vector<64x256xf32>
    %13 = vector.shape_cast %4 : vector<1x256xf32> to vector<1x256xf32>
    %14 = vector.broadcast %13 : vector<1x256xf32> to vector<64x256xf32>
    %15 = vector.shape_cast %5 : vector<1x256xf32> to vector<1x256xf32>
    %16 = vector.broadcast %15 : vector<1x256xf32> to vector<64x256xf32>
    %17 = arith.select %12, %14, %16 : vector<64x256xi1>, vector<64x256xf32>
    %18 = arith.mulf %10, %17 : vector<64x256xf32>
    %cst_13 = arith.constant dense<0.000000e+00> : vector<64xf32>
    %19 = vector.multi_reduction <add>, %18, %cst_13 [1] : vector<64x256xf32> to vector<64xf32>
    %20 = vector.broadcast %6 : f32 to vector<64xf32>
    %21 = arith.addf %19, %20 : vector<64xf32>
    %22 = arith.index_cast %c0_i32 : i32 to index
    %c0_14 = arith.constant 0 : index
    %23 = vector.load %arg6[%22, %c0_14] : memref<2x64xf32, #tpu.memory_space<vmem>>, vector<1x64xf32>
    %24 = vector.shape_cast %23 : vector<1x64xf32> to vector<64xf32>
    %25 = vector.shape_cast %21 : vector<64xf32> to vector<1x64xf32>
    tpu.vector_store %arg6[%22, %c0_14], %25 {strides = array<i32>} : memref<2x64xf32, #tpu.memory_space<vmem>>, vector<1x64xf32>,
    %c1_i32 = arith.constant 1 : i32
    %c64_i32_15 = arith.constant 64 : i32
    %26 = arith.muli %c1_i32, %c64_i32_15 : i32
    %27 = tpu.assume_multiple %26, 64 : i32
    %28 = arith.index_cast %27 : i32 to index
    %c0_16 = arith.constant 0 : index
    %29 = vector.load %arg7[%28, %c0_16] : memref<128x256xf32, #tpu.memory_space<vmem>>, vector<64x256xf32>
    %cst_17 = arith.constant 0.000000e+00 : f32
    %30 = vector.broadcast %cst_17 : f32 to vector<64x256xf32>
    %31 = arith.cmpf ogt, %29, %30 : vector<64x256xf32>
    %32 = vector.shape_cast %4 : vector<1x256xf32> to vector<1x256xf32>
    %33 = vector.broadcast %32 : vector<1x256xf32> to vector<64x256xf32>
    %34 = vector.shape_cast %5 : vector<1x256xf32> to vector<1x256xf32>
    %35 = vector.broadcast %34 : vector<1x256xf32> to vector<64x256xf32>
    %36 = arith.select %31, %33, %35 : vector<64x256xi1>, vector<64x256xf32>
    %37 = arith.mulf %29, %36 : vector<64x256xf32>
    %cst_18 = arith.constant dense<0.000000e+00> : vector<64xf32>
    %38 = vector.multi_reduction <add>, %37, %cst_18 [1] : vector<64x256xf32> to vector<64xf32>
    %39 = vector.broadcast %6 : f32 to vector<64xf32>
    %40 = arith.addf %38, %39 : vector<64xf32>
    %41 = arith.index_cast %c1_i32 : i32 to index
    %c0_19 = arith.constant 0 : index
    %42 = vector.load %arg6[%41, %c0_19] : memref<2x64xf32, #tpu.memory_space<vmem>>, vector<1x64xf32>
    %43 = vector.shape_cast %42 : vector<1x64xf32> to vector<64xf32>
    %44 = vector.shape_cast %40 : vector<64xf32> to vector<1x64xf32>
    tpu.vector_store %arg6[%41, %c0_19], %44 {strides = array<i32>} : memref<2x64xf32, #tpu.memory_space<vmem>>, vector<1x64xf32>,
    %c2_i32 = arith.constant 2 : i32
    return
  }
  func.func @transform_0(%arg0: i32) -> (i32, i32) {
    %c0_i32 = arith.constant 0 : i32
    %c0_i32_0 = arith.constant 0 : i32
    return %arg0, %c0_i32 : i32, i32
  }
  func.func @transform_1(%arg0: i32) -> (i32, i32) {
    %c0_i32 = arith.constant 0 : i32
    %c0_i32_0 = arith.constant 0 : i32
    %c0_i32_1 = arith.constant 0 : i32
    return %c0_i32, %c0_i32_0 : i32, i32
  }
  func.func @transform_2(%arg0: i32) -> (i32, i32) {
    %c0_i32 = arith.constant 0 : i32
    %c0_i32_0 = arith.constant 0 : i32
    %c0_i32_1 = arith.constant 0 : i32
    return %c0_i32, %c0_i32_0 : i32, i32
  }
  func.func @transform_3(%arg0: i32) -> (i32, i32) {
    %c0_i32 = arith.constant 0 : i32
    %c0_i32_0 = arith.constant 0 : i32
    %c0_i32_1 = arith.constant 0 : i32
    return %c0_i32, %c0_i32_0 : i32, i32
  }
  func.func @transform_4(%arg0: i32) -> (i32, i32) {
    %c0_i32 = arith.constant 0 : i32
    %c0_i32_0 = arith.constant 0 : i32
    %c0_i32_1 = arith.constant 0 : i32
    return %c0_i32, %c0_i32_0 : i32, i32
  }
  func.func @transform_5(%arg0: i32) -> (i32, i32) {
    %c0_i32 = arith.constant 0 : i32
    %c0_i32_0 = arith.constant 0 : i32
    return %arg0, %c0_i32 : i32, i32
  }
}

</mosaic_0001>

<bundles_post_ra>
// kernel: tpu_custom_call.1
= control target key start
LH: loop header
LB: loop body
LE: loop exit
PB: predicated region body
PF: predicated region fallthrough
CT: control target
= control target key end

     0   :  { %vm97_vm0 = vcmask 1040384   ;;  %s892_s0 = inlined_call_operand.vmem [shape: f32[128,33], index: 0, kind: input, shape index: {}]   ;;  %s893_s1 = inlined_call_operand.vmem [shape: f32[33,256], index: 1, kind: input, shape index: {}]   ;;  %s894_s2 = inlined_call_operand.vmem [shape: f32[1,256], index: 2, kind: input, shape index: {}]   ;;  %s895_s3 = inlined_call_operand.vmem [shape: f32[1,256], index: 3, kind: input, shape index: {}]   ;;  %s896_s4 = inlined_call_operand.<no memory space> [shape: f32[1,1], index: 4, kind: input, shape index: {}]   ;;  %s897_s5 = inlined_call_operand.hbm [shape: f32[2,64], index: 5, kind: output, shape index: {}]  }
   0x1   :  { %v46_v0 = vld [vmem:[%s893_s1 + $0x40] sm:$0x1]  ;;  %v47_v1 = vld [vmem:[%s893_s1 + $0x48] sm:$0x1]  ;;  %v44_v2 = vld [vmem:[%s893_s1 + $0x30] sm:$0xff] }
   0x2   :  { %562 = vmatpush.msk.msra.mxu0 %vm97_vm0, %v46_v0  ;;  %596 = vmatpush.msk.msra.mxu2 %vm97_vm0, %v46_v0  ;;  %v45_v3 = vld [vmem:[%s893_s1 + $0x38] sm:$0xff]  ;;  %v42_v4 = vld [vmem:[%s893_s1 + $0x20] sm:$0xff]  ;;  %v43_v5 = vld [vmem:[%s893_s1 + $0x28] sm:$0xff] }
   0x3   :  { %579 = vmatpush.msk.msra.mxu1 %vm97_vm0, %v47_v1  ;;  %601 = vmatpush.msk.msra.mxu3 %vm97_vm0, %v47_v1  ;;  %v40_v6 = vld [vmem:[%s893_s1 + $0x10] sm:$0xff]  ;;  %v41_v7 = vld [vmem:[%s893_s1 + $0x18] sm:$0xff]  ;;  %v38_v8 = vld [vmem:[%s893_s1] sm:$0xff] }
   0x4   :  { %116 = vmatpush.msra.mxu0 %v44_v2  ;;  %597 = vmatpush.msra.mxu2 %v44_v2 }
   0x5   :  { %181 = vmatpush.msra.mxu1 %v45_v3  ;;  %602 = vmatpush.msra.mxu3 %v45_v3 }
   0x6   :  { %117 = vmatpush.msra.mxu0 %v42_v4  ;;  %598 = vmatpush.msra.mxu2 %v42_v4 }
   0x7   :  { %182 = vmatpush.msra.mxu1 %v43_v5  ;;  %603 = vmatpush.msra.mxu3 %v43_v5 }
   0x8   :  { %11 = vsyncpa [#allocation5], 0  ;;  %118 = vmatpush.msra.mxu0 %v40_v6  ;;  %599 = vmatpush.msra.mxu2 %v40_v6  ;;  %v39_v9 = vld [vmem:[%s893_s1 + $0x8] sm:$0xff]  ;;  %v22_v10 = vld [vmem:[%s892_s0] sm:$0xff]  ;;  %vm48_vm1 = vcmask 269312   ;;  %s552_s24 = sshll.u32 %s897_s5, 4  ;;  %s553_s24 = int_to_ptr.hbm [resolvable:$true] %s552_s24 }
   0x9   :  { %183 = vmatpush.msra.mxu1 %v41_v7  ;;  %604 = vmatpush.msra.mxu3 %v41_v7  ;;  %v30_v11 = vld [vmem:[%s892_s0 + $0x40] sm:$0xff]  ;;  %v23_v12 = vld [vmem:[%s892_s0 + $0x8] sm:$0xff]  ;;  %v24_v14 = vld [vmem:[%s892_s0 + $0x10] sm:$0xff] }
   0xa   :  { %119 = vmatpush.msra.mxu0 %v38_v8  ;;  %600 = vmatpush.msra.mxu2 %v38_v8  ;;  %v31_v13 = vld [vmem:[%s892_s0 + $0x48] sm:$0xff]  ;;  %v32_v15 = vld [vmem:[%s892_s0 + $0x50] sm:$0xff]  ;;  %v25_v16 = vld [vmem:[%s892_s0 + $0x18] sm:$0xff] }
   0xb   :  { %184 = vmatpush.msra.mxu1 %v39_v9  ;;  %605 = vmatpush.msra.mxu3 %v39_v9  ;;  %v33_v17 = vld [vmem:[%s892_s0 + $0x58] sm:$0xff]  ;;  %v26_v18 = vld [vmem:[%s892_s0 + $0x20] sm:$0xff]  ;;  %v27_v20 = vld [vmem:[%s892_s0 + $0x28] sm:$0xff] }
   0xc   :  { %563 = vmatmul.msk.f32.vlgmr.msra.gmra.mxu0 %vm48_vm1, %v22_v10  ;;  %571 = vmatmul.msk.f32.vlgmr.msra.gmra.mxu2 %vm48_vm1, %v30_v11  ;;  %v34_v19 = vld [vmem:[%s892_s0 + $0x60] sm:$0xff]  ;;  %v35_v21 = vld [vmem:[%s892_s0 + $0x68] sm:$0xff]  ;;  %v28_v22 = vld [vmem:[%s892_s0 + $0x30] sm:$0xff] }
   0xd   :  { %580 = vmatmul.msk.f32.vlgmr.msra.gmra.mxu1 %vm48_vm1, %v22_v10  ;;  %588 = vmatmul.msk.f32.vlgmr.msra.gmra.mxu3 %vm48_vm1, %v30_v11  ;;  %v36_v23 = vld [vmem:[%s892_s0 + $0x70] sm:$0xff]  ;;  %v29_v24 = vld [vmem:[%s892_s0 + $0x38] sm:$0xff]  ;;  %v266_v26 = vld [vmem:[%s894_s2] sm:$0x3] }
   0xe   :  { %v37_v25 = vld [vmem:[%s892_s0 + $0x78] sm:$0xff]  ;;  %v267_v27 = vld [vmem:[%s895_s3] sm:$0x3]  ;;  %v780_v28 = vperm.slane %v266_v26, 0  ;;  %v784_v30 = vperm.slane %v266_v26, 1  ;;  %s633_s3 = smov [#allocation4]  }
   0xf   :  { %v782_v29 = vperm.slane %v267_v27, 0  ;;  %v786_v31 = vperm.slane %v267_v27, 1 }
  0x14   :  { %564 = vmatmul.msk.f32.gmra.mxu0 %vm48_vm1, %v23_v12  ;;  %572 = vmatmul.msk.f32.gmra.mxu2 %vm48_vm1, %v31_v13 }
  0x15   :  { %581 = vmatmul.msk.f32.gmra.mxu1 %vm48_vm1, %v23_v12  ;;  %589 = vmatmul.msk.f32.gmra.mxu3 %vm48_vm1, %v31_v13 }
  0x1c   :  { %565 = vmatmul.msk.f32.gmra.mxu0 %vm48_vm1, %v24_v14  ;;  %573 = vmatmul.msk.f32.gmra.mxu2 %vm48_vm1, %v32_v15 }
  0x1d   :  { %582 = vmatmul.msk.f32.gmra.mxu1 %vm48_vm1, %v24_v14  ;;  %590 = vmatmul.msk.f32.gmra.mxu3 %vm48_vm1, %v32_v15 }
  0x24   :  { %566 = vmatmul.msk.f32.gmra.mxu0 %vm48_vm1, %v25_v16  ;;  %574 = vmatmul.msk.f32.gmra.mxu2 %vm48_vm1, %v33_v17 }
  0x25   :  { %583 = vmatmul.msk.f32.gmra.mxu1 %vm48_vm1, %v25_v16  ;;  %591 = vmatmul.msk.f32.gmra.mxu3 %vm48_vm1, %v33_v17 }
  0x2c   :  { %567 = vmatmul.msk.f32.gmra.mxu0 %vm48_vm1, %v26_v18  ;;  %575 = vmatmul.msk.f32.gmra.mxu2 %vm48_vm1, %v34_v19 }
  0x2d   :  { %584 = vmatmul.msk.f32.gmra.mxu1 %vm48_vm1, %v26_v18  ;;  %592 = vmatmul.msk.f32.gmra.mxu3 %vm48_vm1, %v34_v19 }
  0x34   :  { %568 = vmatmul.msk.f32.gmra.mxu0 %vm48_vm1, %v27_v20  ;;  %576 = vmatmul.msk.f32.gmra.mxu2 %vm48_vm1, %v35_v21 }
  0x35   :  { %585 = vmatmul.msk.f32.gmra.mxu1 %vm48_vm1, %v27_v20  ;;  %593 = vmatmul.msk.f32.gmra.mxu3 %vm48_vm1, %v35_v21 }
  0x3c   :  { %569 = vmatmul.msk.f32.gmra.mxu0 %vm48_vm1, %v28_v22  ;;  %577 = vmatmul.msk.f32.gmra.mxu2 %vm48_vm1, %v36_v23 }
  0x3d   :  { %586 = vmatmul.msk.f32.gmra.mxu1 %vm48_vm1, %v28_v22  ;;  %594 = vmatmul.msk.f32.gmra.mxu3 %vm48_vm1, %v36_v23 }
  0x44   :  { %570 = vmatmul.msk.f32.gmra.mxu0 %vm48_vm1, %v29_v24  ;;  %578 = vmatmul.msk.f32.gmra.mxu2 %vm48_vm1, %v37_v25 }
  0x45   :  { %587 = vmatmul.msk.f32.gmra.mxu1 %vm48_vm1, %v29_v24  ;;  %595 = vmatmul.msk.f32.gmra.mxu3 %vm48_vm1, %v37_v25 }
  0x89   :  { %v121_v32 = vpop.f32.mrf.mxu0 }
  0x8a   :  { %vm288_vm2 = vcmp.gt.f32.partialorder %v121_v32, 0.0  ;;  %v186_v33 = vpop.f32.mrf.mxu1 }
  0x8b   :  { %v314_v34 = vsel %vm288_vm2, %v780_v28, %v782_v29  ;;  %vm289_vm3 = vcmp.gt.f32.partialorder %v186_v33, 0.0 }
  0x8c   :  { %v330_v35 = vmul.f32 %v314_v34, %v121_v32  ;;  %v315_v36 = vsel %vm289_vm3, %v784_v30, %v786_v31 }
  0x8d   :  { %v331_v37 = vmul.f32 %v315_v36, %v186_v33 }
  0x8f   :  { %v145_v38 = vpop.f32.mrf.mxu2  ;;  %v346_v39 = vadd.f32 %v331_v37, %v330_v35 }
  0x90   :  { %vm440_vm4 = vcmp.gt.f32.partialorder %v145_v38, 0.0  ;;  %v210_v40 = vpop.f32.mrf.mxu3 }
  0x91   :  { %v456_v41 = vsel %vm440_vm4, %v780_v28, %v782_v29  ;;  %vm441_vm5 = vcmp.gt.f32.partialorder %v210_v40, 0.0  ;;  %347 = vadd.xlane.f32.xlu0 %v346_v39  ;;  %v124_v42 = vpop.f32.mrf.mxu0 }
  0x92   :  { %v472_v43 = vmul.f32 %v456_v41, %v145_v38  ;;  %v457_v44 = vsel %vm441_vm5, %v784_v30, %v786_v31  ;;  %vm290_vm6 = vcmp.gt.f32.partialorder %v124_v42, 0.0  ;;  %v189_v45 = vpop.f32.mrf.mxu1 }
  0x93   :  { %v473_v46 = vmul.f32 %v457_v44, %v210_v40  ;;  %v316_v47 = vsel %vm290_vm6, %v780_v28, %v782_v29  ;;  %vm291_vm7 = vcmp.gt.f32.partialorder %v189_v45, 0.0 }
  0x94   :  { %v332_v48 = vmul.f32 %v316_v47, %v124_v42  ;;  %v317_v49 = vsel %vm291_vm7, %v784_v30, %v786_v31 }
  0x95   :  { %v333_v50 = vmul.f32 %v317_v49, %v189_v45  ;;  %v488_v51 = vadd.f32 %v473_v46, %v472_v43 }
  0x97   :  { %489 = vadd.xlane.f32.xlu1 %v488_v51  ;;  %v148_v52 = vpop.f32.mrf.mxu2  ;;  %v349_v53 = vadd.f32 %v333_v50, %v332_v48 }
  0x98   :  { %vm442_vm8 = vcmp.gt.f32.partialorder %v148_v52, 0.0  ;;  %v213_v54 = vpop.f32.mrf.mxu3 }
  0x99   :  { %v458_v55 = vsel %vm442_vm8, %v780_v28, %v782_v29  ;;  %vm443_vm9 = vcmp.gt.f32.partialorder %v213_v54, 0.0  ;;  %350 = vadd.xlane.f32.xlu0 %v349_v53  ;;  %v127_v56 = vpop.f32.mrf.mxu0 }
  0x9a   :  { %v474_v57 = vmul.f32 %v458_v55, %v148_v52  ;;  %v459_v58 = vsel %vm443_vm9, %v784_v30, %v786_v31  ;;  %vm292_vm10 = vcmp.gt.f32.partialorder %v127_v56, 0.0  ;;  %v192_v59 = vpop.f32.mrf.mxu1 }
  0x9b   :  { %v475_v60 = vmul.f32 %v459_v58, %v213_v54  ;;  %v318_v61 = vsel %vm292_vm10, %v780_v28, %v782_v29  ;;  %vm293_vm11 = vcmp.gt.f32.partialorder %v192_v59, 0.0 }
  0x9c   :  { %v334_v62 = vmul.f32 %v318_v61, %v127_v56  ;;  %v319_v63 = vsel %vm293_vm11, %v784_v30, %v786_v31 }
  0x9d   :  { %v335_v0 = vmul.f32 %v319_v63, %v192_v59  ;;  %v491_v1 = vadd.f32 %v475_v60, %v474_v57 }
  0x9f   :  { %492 = vadd.xlane.f32.xlu1 %v491_v1  ;;  %v151_v2 = vpop.f32.mrf.mxu2  ;;  %v352_v3 = vadd.f32 %v335_v0, %v334_v62 }
  0xa0   :  { %vm444_vm12 = vcmp.gt.f32.partialorder %v151_v2, 0.0  ;;  %v216_v4 = vpop.f32.mrf.mxu3 }
  0xa1   :  { %v460_v5 = vsel %vm444_vm12, %v780_v28, %v782_v29  ;;  %vm445_vm13 = vcmp.gt.f32.partialorder %v216_v4, 0.0  ;;  %353 = vadd.xlane.f32.xlu2 %v352_v3  ;;  %v130_v6 = vpop.f32.mrf.mxu0 }
  0xa2   :  { %v461_v7 = vsel %vm445_vm13, %v784_v30, %v786_v31  ;;  %vm294_vm14 = vcmp.gt.f32.partialorder %v130_v6, 0.0  ;;  %v195_v8 = vpop.f32.mrf.mxu1  ;;  %v476_v9 = vmul.f32 %v460_v5, %v151_v2 }
  0xa3   :  { %v477_v10 = vmul.f32 %v461_v7, %v216_v4  ;;  %v320_v11 = vsel %vm294_vm14, %v780_v28, %v782_v29  ;;  %vm295_vm15 = vcmp.gt.f32.partialorder %v195_v8, 0.0 }
  0xa4   :  { %v336_v12 = vmul.f32 %v320_v11, %v130_v6  ;;  %v321_v13 = vsel %vm295_vm15, %v784_v30, %v786_v31 }
  0xa5   :  { %v337_v14 = vmul.f32 %v321_v13, %v195_v8  ;;  %v494_v16 = vadd.f32 %v477_v10, %v476_v9 }
  0xa7   :  { %v154_v15 = vpop.f32.mrf.mxu2  ;;  %v355_v17 = vadd.f32 %v337_v14, %v336_v12 }
  0xa8   :  { %vm446_vm0 = vcmp.gt.f32.partialorder %v154_v15, 0.0  ;;  %v219_v18 = vpop.f32.mrf.mxu3 }
  0xa9   :  { %v462_v19 = vsel %vm446_vm0, %v780_v28, %v782_v29  ;;  %vm447_vm1 = vcmp.gt.f32.partialorder %v219_v18, 0.0  ;;  %495 = vadd.xlane.f32.xlu2 %v494_v16  ;;  %356 = vadd.xlane.f32.xlu0 %v355_v17  ;;  %v133_v20 = vpop.f32.mrf.mxu0 }
  0xaa   :  { %v478_v21 = vmul.f32 %v462_v19, %v154_v15  ;;  %v463_v22 = vsel %vm447_vm1, %v784_v30, %v786_v31  ;;  %vm296_vm2 = vcmp.gt.f32.partialorder %v133_v20, 0.0  ;;  %v198_v23 = vpop.f32.mrf.mxu1 }
  0xab   :  { %v479_v24 = vmul.f32 %v463_v22, %v219_v18  ;;  %v322_v25 = vsel %vm296_vm2, %v780_v28, %v782_v29  ;;  %vm297_vm3 = vcmp.gt.f32.partialorder %v198_v23, 0.0  ;;  %vm392_vm2 = vcmask 130112  }
  0xac   :  { %v338_v26 = vmul.f32 %v322_v25, %v133_v20  ;;  %v323_v27 = vsel %vm297_vm3, %v784_v30, %v786_v31  ;;  %vm396_vm3 = vcmask 195712  }
  0xad   :  { %v339_v32 = vmul.f32 %v323_v27, %v198_v23  ;;  %v497_v33 = vadd.f32 %v479_v24, %v478_v21 }
  0xaf   :  { %498 = vadd.xlane.f32.xlu1 %v497_v33  ;;  %v157_v34 = vpop.f32.mrf.mxu2  ;;  %v358_v35 = vadd.f32 %v339_v32, %v338_v26  ;;  %v387_v33 = vlaneseq }
  0xb0   :  { %vm448_vm4 = vcmp.gt.f32.partialorder %v157_v34, 0.0  ;;  %v222_v36 = vpop.f32.mrf.mxu3 }
  0xb1   :  { %v464_v37 = vsel %vm448_vm4, %v780_v28, %v782_v29  ;;  %vm449_vm5 = vcmp.gt.f32.partialorder %v222_v36, 0.0  ;;  %359 = vadd.xlane.f32.xlu2 %v358_v35  ;;  %v136_v38 = vpop.f32.mrf.mxu0  ;;  %vm400_vm4 = vcmask 261312  }
  0xb2   :  { %v480_v39 = vmul.f32 %v464_v37, %v157_v34  ;;  %v465_v40 = vsel %vm449_vm5, %v784_v30, %v786_v31  ;;  %vm298_vm6 = vcmp.gt.f32.partialorder %v136_v38, 0.0  ;;  %v201_v41 = vpop.f32.mrf.mxu1  ;;  %v855_v34 = vstv %s896_s4  ;;  %s550_s4 = sshll.u32 %s633_s3, 4  ;;  %s551_s4 = int_to_ptr.vmem [resolvable:$true] %s550_s4 }
  0xb3   :  { %v481_v42 = vmul.f32 %v465_v40, %v222_v36  ;;  %v324_v43 = vsel %vm298_vm6, %v780_v28, %v782_v29  ;;  %vm299_vm7 = vcmp.gt.f32.partialorder %v201_v41, 0.0  ;;  %vm404_vm5 = vcmask 326912  }
  0xb4   :  { %v340_v44 = vmul.f32 %v324_v43, %v136_v38  ;;  %v325_v45 = vsel %vm299_vm7, %v784_v30, %v786_v31  ;;  %vm408_vm6 = vcmask 392512   ;;  %vm412_vm7 = vcmask 458112  }
  0xb5   :  { %v341_v46 = vmul.f32 %v325_v45, %v201_v41  ;;  %v500_v47 = vadd.f32 %v481_v42, %v480_v39 }
  0xb7   :  { %501 = vadd.xlane.f32.xlu0 %v500_v47  ;;  %v160_v48 = vpop.f32.mrf.mxu2  ;;  %v361_v49 = vadd.f32 %v341_v46, %v340_v44 }
  0xb8   :  { %vm450_vm8 = vcmp.gt.f32.partialorder %v160_v48, 0.0  ;;  %v225_v50 = vpop.f32.mrf.mxu3 }
  0xb9   :  { %v466_v51 = vsel %vm450_vm8, %v780_v28, %v782_v29  ;;  %vm451_vm9 = vcmp.gt.f32.partialorder %v225_v50, 0.0  ;;  %362 = vadd.xlane.f32.xlu1 %v361_v49  ;;  %v139_v52 = vpop.f32.mrf.mxu0  ;;  %vm416_vm8 = vcmask 523712  }
  0xba   :  { %v482_v53 = vmul.f32 %v466_v51, %v160_v48  ;;  %v467_v54 = vsel %vm451_vm9, %v784_v30, %v786_v31  ;;  %vm300_vm10 = vcmp.gt.f32.partialorder %v139_v52, 0.0  ;;  %v204_v55 = vpop.f32.mrf.mxu1  ;;  %vm419_vm9 = vcmask 516096  }
  0xbb   :  { %v483_v56 = vmul.f32 %v467_v54, %v225_v50  ;;  %v326_v57 = vsel %vm300_vm10, %v780_v28, %v782_v29  ;;  %vm301_vm11 = vcmp.gt.f32.partialorder %v204_v55, 0.0 }
  0xbc   :  { %v342_v58 = vmul.f32 %v326_v57, %v139_v52  ;;  %v327_v59 = vsel %vm301_vm11, %v784_v30, %v786_v31 }
  0xbd   :  { %v343_v60 = vmul.f32 %v327_v59, %v204_v55  ;;  %v503_v61 = vadd.f32 %v483_v56, %v482_v53 }
  0xbf   :  { %504 = vadd.xlane.f32.xlu2 %v503_v61  ;;  %v163_v62 = vpop.f32.mrf.mxu2  ;;  %v364_v63 = vadd.f32 %v343_v60, %v342_v58 }
  0xc0   :  { %vm452_vm12 = vcmp.gt.f32.partialorder %v163_v62, 0.0  ;;  %v228_v0 = vpop.f32.mrf.mxu3 }
  0xc1   :  { %v468_v1 = vsel %vm452_vm12, %v780_v28, %v782_v29  ;;  %vm453_vm13 = vcmp.gt.f32.partialorder %v228_v0, 0.0  ;;  %365 = vadd.xlane.f32.xlu0 %v364_v63  ;;  %v142_v2 = vpop.f32.mrf.mxu0 }
  0xc2   :  { %v484_v3 = vmul.f32 %v468_v1, %v163_v62  ;;  %v469_v4 = vsel %vm453_vm13, %v784_v30, %v786_v31  ;;  %vm302_vm14 = vcmp.gt.f32.partialorder %v142_v2, 0.0  ;;  %v207_v5 = vpop.f32.mrf.mxu1 }
  0xc3   :  { %v485_v6 = vmul.f32 %v469_v4, %v228_v0  ;;  %v328_v7 = vsel %vm302_vm14, %v780_v28, %v782_v29  ;;  %vm303_vm15 = vcmp.gt.f32.partialorder %v207_v5, 0.0 }
  0xc4   :  { %v344_v8 = vmul.f32 %v328_v7, %v142_v2  ;;  %v329_v9 = vsel %vm303_vm15, %v784_v30, %v786_v31 }
  0xc5   :  { %v345_v10 = vmul.f32 %v329_v9, %v207_v5  ;;  %v506_v11 = vadd.f32 %v485_v6, %v484_v3 }
  0xc7   :  { %507 = vadd.xlane.f32.xlu1 %v506_v11  ;;  %v166_v12 = vpop.f32.mrf.mxu2  ;;  %v367_v13 = vadd.f32 %v345_v10, %v344_v8 }
  0xc8   :  { %vm454_vm0 = vcmp.gt.f32.partialorder %v166_v12, 0.0  ;;  %v231_v14 = vpop.f32.mrf.mxu3 }
  0xc9   :  { %v470_v15 = vsel %vm454_vm0, %v780_v28, %v782_v29  ;;  %vm455_vm1 = vcmp.gt.f32.partialorder %v231_v14, 0.0  ;;  %368 = vadd.xlane.f32.xlu2 %v367_v13  ;;  %v388_v29 = vand.u32 127, %v387_v33 }
  0xca   :  { %v486_v16 = vmul.f32 %v470_v15, %v166_v12  ;;  %v471_v17 = vsel %vm455_vm1, %v784_v30, %v786_v31 }
  0xcb   :  { %v487_v18 = vmul.f32 %v471_v17, %v231_v14  ;;  %v390_v30 = vadd.s32 4294967288, %v388_v29  ;;  %v394_v36 = vadd.s32 4294967280, %v388_v29  ;;  %v398_v40 = vadd.s32 4294967272, %v388_v29 }
  0xcc   :  { %v402_v44 = vadd.s32 4294967264, %v388_v29  ;;  %v406_v47 = vadd.s32 4294967256, %v388_v29  ;;  %v410_v51 = vadd.s32 4294967248, %v388_v29  ;;  %v414_v62 = vadd.s32 4294967240, %v388_v29 }
  0xcd   :  { %v509_v19 = vadd.f32 %v487_v18, %v486_v16 }
  0xcf   :  { %510 = vadd.xlane.f32.xlu0 %v509_v19 }
 0x104   :  { %v348_v20 = vpop.xlane.xlu0 %347 }
 0x105   :  { %v371_v39 = vadd.f32 %v855_v34, %v348_v20 }
 0x107   :  { %v389_v53 = vperm.slane %v371_v39, %v388_v29 }
 0x10a   :  { %v490_v22 = vpop.xlane.xlu1 %489 }
 0x10b   :  { %v512_v43 = vadd.f32 %v490_v22, %v855_v34 }
 0x10c   :  { %v351_v23 = vpop.xlane.xlu0 %350 }
 0x10d   :  { %v372_v31 = vadd.f32 %v855_v34, %v351_v23  ;;  %v528_v55 = vperm.slane %v512_v43, %v388_v29 }
 0x10f   :  { %v391_v46 = vperm.slane %v372_v31, %v390_v30 }
 0x111   :  { %v393_v58 = vsel %vm392_vm2, %v391_v46, %v389_v53 }
 0x112   :  { %v493_v25 = vpop.xlane.xlu1 %492 }
 0x113   :  { %v513_v49 = vadd.f32 %v493_v25, %v855_v34 }
 0x114   :  { %v354_v21 = vpop.xlane.xlu2 %353 }
 0x115   :  { %v373_v37 = vadd.f32 %v855_v34, %v354_v21  ;;  %v529_v63 = vperm.slane %v513_v49, %v390_v30 }
 0x117   :  { %v395_v50 = vperm.slane %v373_v37, %v394_v36  ;;  %v530_v15 = vsel %vm392_vm2, %v529_v63, %v528_v55 }
 0x119   :  { %v397_v0 = vsel %vm396_vm3, %v395_v50, %v393_v58 }
 0x11c   :  { %v496_v24 = vpop.xlane.xlu2 %495  ;;  %v357_v26 = vpop.xlane.xlu0 %356 }
 0x11d   :  { %v374_v41 = vadd.f32 %v855_v34, %v357_v26  ;;  %v514_v56 = vadd.f32 %v496_v24, %v855_v34 }
 0x11f   :  { %v399_v54 = vperm.slane %v374_v41, %v398_v40  ;;  %v531_v7 = vperm.slane %v514_v56, %v394_v36 }
 0x121   :  { %v401_v4 = vsel %vm400_vm4, %v399_v54, %v397_v0  ;;  %v532_v18 = vsel %vm396_vm3, %v531_v7, %v530_v15 }
 0x122   :  { %v499_v27 = vpop.xlane.xlu1 %498 }
 0x123   :  { %v515_v59 = vadd.f32 %v499_v27, %v855_v34 }
 0x124   :  { %v360_v32 = vpop.xlane.xlu2 %359 }
 0x125   :  { %v375_v45 = vadd.f32 %v855_v34, %v360_v32  ;;  %v533_v10 = vperm.slane %v515_v59, %v398_v40 }
 0x127   :  { %v403_v57 = vperm.slane %v375_v45, %v402_v44  ;;  %v534_v21 = vsel %vm400_vm4, %v533_v10, %v532_v18 }
 0x129   :  { %v405_v8 = vsel %vm404_vm5, %v403_v57, %v401_v4 }
 0x12a   :  { %v502_v28 = vpop.xlane.xlu0 %501 }
 0x12b   :  { %v516_v1 = vadd.f32 %v502_v28, %v855_v34 }
 0x12c   :  { %v363_v35 = vpop.xlane.xlu1 %362 }
 0x12d   :  { %v376_v48 = vadd.f32 %v855_v34, %v363_v35  ;;  %v535_v13 = vperm.slane %v516_v1, %v402_v44 }
 0x12f   :  { %v407_v60 = vperm.slane %v376_v48, %v406_v47  ;;  %v536_v23 = vsel %vm404_vm5, %v535_v13, %v534_v21 }
 0x131   :  { %v409_v11 = vsel %vm408_vm6, %v407_v60, %v405_v8 }
 0x132   :  { %v505_v38 = vpop.xlane.xlu2 %504 }
 0x133   :  { %v517_v5 = vadd.f32 %v505_v38, %v855_v34 }
 0x134   :  { %v366_v42 = vpop.xlane.xlu0 %365 }
 0x135   :  { %v377_v52 = vadd.f32 %v855_v34, %v366_v42  ;;  %v537_v16 = vperm.slane %v517_v5, %v406_v47 }
 0x137   :  { %v411_v2 = vperm.slane %v377_v52, %v410_v51  ;;  %v538_v24 = vsel %vm408_vm6, %v537_v16, %v536_v23 }
 0x139   :  { %v413_v14 = vsel %vm412_vm7, %v411_v2, %v409_v11 }
 0x13a   :  { %v508_v61 = vpop.xlane.xlu1 %507 }
 0x13b   :  { %v518_v9 = vadd.f32 %v508_v61, %v855_v34 }
 0x13c   :  { %v369_v3 = vpop.xlane.xlu2 %368 }
 0x13d   :  { %v378_v6 = vadd.f32 %v855_v34, %v369_v3  ;;  %v539_v19 = vperm.slane %v518_v9, %v410_v51 }
 0x13f   :  { %v415_v12 = vperm.slane %v378_v6, %v414_v62  ;;  %v540_v26 = vsel %vm412_vm7, %v539_v19, %v538_v24 }
 0x141   :  { %v417_v17 = vsel %vm416_vm8, %v415_v12, %v413_v14 }
 0x142   :  { %v511_v20 = vpop.xlane.xlu0 %510  ;;  %420 = vst.msk [vmem:[#allocation4] sm:$0x1] %vm419_vm9, %v417_v17 }
 0x143   :  { %v519_v22 = vadd.f32 %v511_v20, %v855_v34 }
 0x145   :  { %v541_v25 = vperm.slane %v519_v22, %v414_v62 }
 0x147   :  { %v542_v27 = vsel %vm416_vm8, %v541_v25, %v540_v26 }
 0x148   :  { %544 = vst.msk [vmem:[#allocation4 + $0x1] sm:$0x1] %vm419_vm9, %v542_v27 }
 0x149   :  { %555 = dma.vmem_to_hbm [thread:$0]  %s551_s4, 32, %s553_s24, [#allocation5]  }
 0x14a   :  { %631 = dma.done.wait [#allocation5], 32  }
 0x14b   :  { %632 = vsyncadd [#allocation5], 4294967264 }
 0x14c   :  { %560 = vsyncpa [#allocation5], 1 }

</bundles_post_ra>
